<compile_context>
chip_gen: v7x
topology: tpu7x:2x2x1
jax: 0.10.0
libtpu: 0.0.40
codegen_flags: <defaults>
</compile_context>

<pallas_src>
import jax
import jax.numpy as jnp
from jax.experimental import pallas as pl
from jax.experimental.pallas import tpu as pltpu

MASK_LIMIT = 100          # mask_limit
MASK_NUMBER = 0           # mask_number
MASK_THRESHOLD = 0.0      # SAM default mask_threshold used by predict_torch
TARGET_LENGTH = 1024      # SAM ResizeLongestSide target long side
TOTE_CATEGORY_ID = 1      # COCO category_id for 'Tote' (category_mapping={'Tote':0,'Object':1})

# Double-buffered (f32-in + int8-out) tile byte budget: safe under v5e's
# 16 MiB scoped-VMEM default and far under v7x's 64 MiB physical VMEM.
VMEM_TILE_BUDGET = 10 * 1024 * 1024
VMEM_LIMIT_BYTES = 32 * 1024 * 1024


def _round_up(x, m):
    return ((x + m - 1) // m) * m


# -------------- mask kernel: channel select + threshold (streaming) --------------
def _mask_kernel(logits_ref, mask_ref):
    # BlockSpec squeezed the multimask-channel dim -> logits_ref is a (TB, TH, W)
    # tile of the `mask_number` channel only.  Emit int8 0/1 directly (SAM's
    # binarisation, 1 B/elem HBM write; no wrapper-side bool cast pass).
    m = (logits_ref[...] > MASK_THRESHOLD).astype(jnp.int8)        # (TB, TH, W)
    w = m.shape[-1]
    w_pad = mask_ref.shape[-1]
    if w_pad != w:
        # keep the store lane-dense: pad to the next 128-multiple, wrapper crops.
        m = jnp.concatenate(
            [m, jnp.zeros(m.shape[:-1] + (w_pad - w,), jnp.int8)], axis=-1)
    mask_ref[...] = m


def _derive_tiles(n, h, w, w_pad):
    """Pick (TB boxes, TH rows) per grid step from a generation-safe VMEM budget."""
    tb = min(8, n)
    if n >= 2:
        # keep >= 2 blocks on the leading parallel axis so v7x's 2 TCs both get work
        tb = min(tb, pl.cdiv(n, 2))
    tb = max(tb, 1)
    # double-buffered f32 input + int8 output bytes per mask row, per step
    bytes_per_row = 2 * tb * (4 * w + w_pad)
    th = max(VMEM_TILE_BUDGET // bytes_per_row, 8)
    if th >= h:
        th = h
    else:
        th = max((th // 8) * 8, 8)    # (8,128) constraint: row tile multiple of 8 (or == H)
    return int(tb), int(th)


def select_and_threshold_masks(mask_logits):
    """masks[:, MASK_NUMBER, :, :] > MASK_THRESHOLD, returned as int8 0/1 of shape (N, H, W)."""
    n, m, h, w = mask_logits.shape
    w_pad = _round_up(w, 128)
    tb, th = _derive_tiles(n, h, w, w_pad)
    grid = (pl.cdiv(n, tb), pl.cdiv(h, th))
    masks_i8 = pl.pallas_call(
        _mask_kernel,
        out_shape=jax.ShapeDtypeStruct((n, h, w_pad), jnp.int8),
        grid=grid,
        in_specs=[pl.BlockSpec((tb, pl.Squeezed(), th, w),
                               lambda i, j: (i, MASK_NUMBER, j, 0))],
        out_specs=pl.BlockSpec((tb, th, w_pad), lambda i, j: (i, j, 0)),
        compiler_params=pltpu.CompilerParams(
            dimension_semantics=("parallel", "parallel"),
            vmem_limit_bytes=VMEM_LIMIT_BYTES),
        cost_estimate=pl.CostEstimate(
            flops=n * h * w, transcendentals=0,
            bytes_accessed=n * h * w * 4 + n * h * w_pad),
    )(mask_logits)
    if w_pad != w:
        masks_i8 = masks_i8[:, :, :w]
    return masks_i8


# ----------------------------------- glue -----------------------------------------
def _sam_preprocess_shape(oldh, oldw, long_side_length):
    # ResizeLongestSide.get_preprocess_shape
    scale = long_side_length * 1.0 / max(oldh, oldw)
    return int(oldh * scale + 0.5), int(oldw * scale + 0.5)


class InstanceSegmenter:
    """JAX/Pallas port of the tensor math in the PyTorch InstanceSegmenter.forward."""

    def __init__(self):
        self.max_objects = 0

    def forward(self, bboxes_xywh, category_ids, mask_logits, original_size):
        # glue: annotation truncation (bboxes[:mask_limit, :], labels[:mask_limit])
        bboxes_xywh = bboxes_xywh[:MASK_LIMIT, :]
        category_ids = category_ids[:MASK_LIMIT]
        mask_logits = mask_logits[:MASK_LIMIT]

        # ---- O(N*4) box math / scores / labels: plain jnp (XLA fuses; a
        # ---- dedicated pallas_call costs more in launch + DMA than the work).
        bboxes = bboxes_xywh.astype(jnp.float32)
        xy = bboxes[:, 0:2]
        xyxy = jnp.concatenate([xy, xy + bboxes[:, 2:4]], axis=1)   # box_convert xywh->xyxy

        old_h, old_w = original_size
        new_h, new_w = _sam_preprocess_shape(old_h, old_w, TARGET_LENGTH)
        scale = jnp.array([new_w / old_w, new_h / old_h,
                           new_w / old_w, new_h / old_h], dtype=jnp.float32)
        transformed_boxes = xyxy * scale        # ResizeLongestSide.apply_boxes_torch
        # TODO(synk): sam.predict_torch (ViT image encoder + prompt encoder + mask
        # decoder) is a full pretrained network with no single-kernel Pallas
        # equivalent; `transformed_boxes` would be its `boxes=` prompt and
        # `mask_logits` stands in for its multimask output logits.
        _ = transformed_boxes

        scores = jnp.ones((xyxy.shape[0],), jnp.float32)            # torch.ones(N)
        # category_mapping = {'Tote': 0, 'Object': 1}
        # TODO(synk): the PyTorch dict lookup raises KeyError on unknown category
        # ids; here any non-Tote id maps to 1 ('Object').
        pred_classes = jnp.where(category_ids == TOTE_CATEGORY_ID, 0, 1).astype(jnp.int32)

        # ---- Pallas kernel (streaming O(N*H*W)): masks[:, mask_number] > threshold
        pred_masks = select_and_threshold_masks(mask_logits)

        n = int(pred_classes.shape[0])
        if self.max_objects < n - 1:
            self.max_objects = n - 1

        instances = {
            "image_size": (old_h, old_w),
            "pred_masks": pred_masks,       # (N, H, W) int8 0/1 (SAM binarised mask; bool semantics)
            "pred_boxes": xyxy,             # (N, 4) float32 xyxy  (Boxes(bboxes))
            "scores": scores,               # (N,) float32 (all ones)
            "pred_classes": pred_classes,   # (N,) int32  ({'Tote':0,'Object':1})
        }
        return [{"instances": instances}]


if __name__ == "__main__":
    key = jax.random.PRNGKey(0)
    k1, k2, k3 = jax.random.split(key, 3)

    N, M, H, W = 8, 3, 128, 128          # boxes, multimask outputs, mask spatial
    original_size = (H, W)               # img1.shape[:2]

    xy = jax.random.uniform(k1, (N, 2), jnp.float32, 0.0, 64.0)
    wh = jax.random.uniform(k2, (N, 2), jnp.float32, 1.0, 64.0)
    bboxes_xywh = jnp.concatenate([xy, wh], axis=1)          # COCO xywh boxes

    # deterministic stand-in for SAM's multimask output logits (N, 3, H, W)
    mask_logits = jax.random.normal(k3, (N, M, H, W), dtype=jnp.float32)

    # COCO category ids: 1 = 'Tote', 2 = 'Object'
    category_ids = jnp.array([1, 2, 2, 1, 2, 2, 2, 1], dtype=jnp.int32)

    seg = InstanceSegmenter()
    out = seg.forward(bboxes_xywh, category_ids, mask_logits, original_size)
    inst = out[0]["instances"]
    jax.block_until_ready((inst["pred_masks"], inst["pred_boxes"],
                           inst["scores"], inst["pred_classes"]))

    # sanity check against a pure-jnp reference (exact math, no tolerances needed)
    ref_xyxy = jnp.concatenate([xy, xy + wh], axis=1)
    ref_masks = (mask_logits[:, MASK_NUMBER, :, :] > MASK_THRESHOLD).astype(jnp.int8)
    ref_classes = jnp.where(category_ids == TOTE_CATEGORY_ID, 0, 1).astype(jnp.int32)
    assert bool(jnp.array_equal(inst["pred_boxes"], ref_xyxy))
    assert bool(jnp.array_equal(inst["pred_masks"], ref_masks))
    assert bool(jnp.array_equal(inst["pred_classes"], ref_classes))
    assert bool(jnp.array_equal(inst["scores"], jnp.ones((N,), jnp.float32)))

    print("KERNEL_OK")
</pallas_src>

<mosaic_0001>
module attributes {stable_mosaic.version = 11 : i64} {
  func.func @_mask_kernel(%arg0: i32, %arg1: i32, %arg2: memref<4x1x128x128xf32, #tpu.memory_space<vmem>>, %arg3: memref<4x128x128xi8, #tpu.memory_space<vmem>>) attributes {dimension_semantics = [#tpu.dimension_semantics<parallel>, #tpu.dimension_semantics<parallel>], iteration_bounds = array<i64: 2, 1>, scalar_prefetch = 0 : i64, scratch_operands = 0 : i64, tpu.core_type = #tpu.core_type<tc>, window_params = [{transform_indices = @transform_0, window_bounds = array<i64: 4, 1, 128, 128>}, {transform_indices = @transform_1, window_bounds = array<i64: 4, 128, 128>}]} {
    %c0 = arith.constant 0 : index
    %c0_0 = arith.constant 0 : index
    %c0_1 = arith.constant 0 : index
    %c0_2 = arith.constant 0 : index
    %0 = vector.load %arg2[%c0, %c0_0, %c0_1, %c0_2] : memref<4x1x128x128xf32, #tpu.memory_space<vmem>>, vector<4x1x128x128xf32>
    %1 = vector.shape_cast %0 : vector<4x1x128x128xf32> to vector<4x128x128xf32>
    %cst = arith.constant 0.000000e+00 : f32
    %2 = vector.broadcast %cst : f32 to vector<4x128x128xf32>
    %3 = arith.cmpf ogt, %1, %2 : vector<4x128x128xf32>
    %4 = arith.extui %3 : vector<4x128x128xi1> to vector<4x128x128xi8>
    %c0_3 = arith.constant 0 : index
    %c0_4 = arith.constant 0 : index
    %c0_5 = arith.constant 0 : index
    %5 = vector.load %arg3[%c0_3, %c0_4, %c0_5] : memref<4x128x128xi8, #tpu.memory_space<vmem>>, vector<4x128x128xi8>
    tpu.vector_store %arg3[%c0_3, %c0_4, %c0_5], %4 {strides = array<i32>} : memref<4x128x128xi8, #tpu.memory_space<vmem>>, vector<4x128x128xi8>,
    return
  }
  func.func @transform_0(%arg0: i32, %arg1: i32) -> (i32, i32, i32, i32) {
    %c0_i32 = arith.constant 0 : i32
    %c0_i32_0 = arith.constant 0 : i32
    %c0_i32_1 = arith.constant 0 : i32
    return %arg0, %c0_i32, %arg1, %c0_i32_0 : i32, i32, i32, i32
  }
  func.func @transform_1(%arg0: i32, %arg1: i32) -> (i32, i32, i32) {
    %c0_i32 = arith.constant 0 : i32
    %c0_i32_0 = arith.constant 0 : i32
    return %arg0, %arg1, %c0_i32 : i32, i32, i32
  }
}

</mosaic_0001>

<bundles_post_ra>
// kernel: tpu_custom_call.1
= control target key start
LH: loop header
LB: loop body
LE: loop exit
PB: predicated region body
PF: predicated region fallthrough
CT: control target
= control target key end

     0   :  { %6 = vsyncpa [#allocation3], 0  ;;  %s954_s0 = inlined_call_operand.hbm [shape: f32[8,3,128,128], index: 0, kind: input, shape index: {}]   ;;  %s955_s1 = inlined_call_operand.hbm [shape: s8[8,128,128], index: 1, kind: output, shape index: {}]  }
   0x1   :  { %8 = vsyncpa [#allocation3 + $0x1], 0 }
   0x2   :  { %9 = vsyncpa [#allocation4], 0 }
   0x3   :  { %11 = vsyncpa [#allocation4 + $0x1], 0  ;;  %s696_s6 = smov 0   ;;  %s698_s7 = smov 0  }
   0x4   :  { %s700_s8 = smov 0   ;;  %s702_s9 = smov 0  }
   0x5   :  { %s704_s10 = smov 0   ;;  %s706_s11 = smov 0  }
   0x6 LB: > { %s497_s12 = sadd.s32 4294967295, %s674_s11   ;;  %s498_s13 = sadd.s32 4294967294, %s674_s11   ;;  %s674_s11 = sphi %s706_s11, %s17_s11   ;;  %s670_s10 = sphi %s704_s10, %s964_s10   ;;  %s666_s9 = sphi %s702_s9, %s963_s9   ;;  %s662_s8 = sphi %s700_s8, %s962_s8   ;;  %s658_s7 = sphi %s698_s7, %s961_s7   ;;  %s654_s6 = sphi %s696_s6, %s960_s6  }
   0x7   : > { %s29_s14 = sadd.s32 1, %s670_s10  ;;  %s38_s15 = sadd.s32 1, %s662_s8 }
   0x8   : > { %p31_p0 = scmp.ge.s32.totalorder %s29_s14, 2  ;;  %p45_p1 = scmp.ne.s32.totalorder %s662_s8, %s658_s7 }
   0x9   : > { %p46_p2 = scmp.eq.s32.totalorder %s674_s11, 0  ;;  %p51_p3 = scmp.ne.s32.totalorder %s658_s7, %s654_s6 }
   0xa   : > { %s966_s14 = smov (%p31_p0, %s29_s14), 0  ;;  %p52_p5 = scmp.eq.s32.totalorder %s497_s12, 0 }
   0xb   : > { %p737_p4 = por %p46_p2, %p45_p1  ;;  %s33_s17 = ssub.s32 %s670_s10, %s966_s14 }
   0xc   : > { %p77_p6 = scmp.eq.s32.totalorder %s497_s12, 1  ;;  %p36_p7 = scmp.eq.s32.totalorder %s33_s17, 0 }
   0xd   : > { %p743_p8 = por %p52_p5, %p51_p3  ;;  %p83_p10 = scmp.eq.s32.totalorder %s498_s13, 1 }
   0xe   : > { %p747_p9 = por %p77_p6, %p45_p1  ;;  %p500_p12 = scmp.ge.s32.totalorder %s674_s11, 2 }
   0xf   : > { %s752_s20 = scalar_select %p36_p7, %s662_s8, %s38_s15  }
  0x10   : > { %p754_p11 = por %p83_p10, %p51_p3  ;;  %99 = sbr.rel (%p500_p12) target bundleno = 37 (0x25), region = 16 }
  0x17   : > { %s103_s22 = sand.u32 1, %s662_s8   ;;  %s518_s23 = smul.u32 24576, %s670_s10 }
  0x18   : > { %s501_s24 = sshll.u32 %s103_s22, 9  ;;  %s676_s3 = smov 6144  }
  0x19   : > { %s116_s27 = scalar_lea.hbm %s954_s0, %s518_s23  ;;  %s107_s29 = scalar_lea.vmem [#allocation2], %s501_s24 }
  0x1a   : > { %s519_s28 = scalar_select %p737_p4, [#allocation0], [#allocation8] }
  0x1b   : > { %s129_s30 = sshll.u32 %s107_s29, 4  ;;  %520 = sst [smem:[#allocation7]] (%p737_p4), %s676_s3  ;;  %s130_s30 = int_to_ptr.vmem [resolvable:$true] %s129_s30 }
  0x1c   : > { %s121_s2 = sld [smem:[%s519_s28]]   ;;  %s677_s4 = smov 2048  }
  0x1d   : > { %521 = sst [smem:[#allocation7 + $0x1]] (%p737_p4), %s677_s4  ;;  %s678_s5 = smov 16  }
  0x1e   : > { %522 = sst [smem:[#allocation7 + $0x2]] (%p737_p4), %s678_s5  ;;  %s679_s12 = smov 128  }
  0x1f   : > { %523 = sst [smem:[#allocation7 + $0x3]] (%p737_p4), %s679_s12  ;;  %s680_s15 = smov 8  }
  0x20   : > { %524 = sst [smem:[#allocation7 + $0x4]] (%p737_p4), %s679_s12  ;;  %s104_s23 = scalar_lea.sflag [#allocation3], %s103_s22 }
  0x21   : > { %525 = sst [smem:[#allocation7 + $0x5]] (%p737_p4), %s680_s15  ;;  %s681_s24 = smov [#allocation6]  }
  0x22   : > { %s505_s13 = sshll.u32 %s121_s2, 26 }
  0x23   : > { %s506_s17 = sadd.s32 134217728, %s505_s13 }
  0x24   : > { %526 = dma.general (%p737_p4), %s116_s27, 8192, %s130_s30, %s104_s23, %s681_s24, [#allocation7], %s506_s17, 0  }
  0x25 PF: > { %p507_p13 = scmp.ge.s32.totalorder %s674_s11, 1  ;;  %p150_p0 = scmp.lt.s32.totalorder %s674_s11, 3 }
  0x27   : > { %p151_p1 = pnand %p507_p13, %p150_p0 }
  0x28   : > { %s785_s25 = sand.u32 (!%p151_p1), 1, %s658_s7  }
  0x29   : > { %154 = sbr.rel (%p151_p1) target bundleno = 115 (0x73), region = 24  ;;  %s508_s26 = sshll.u32 (!%p151_p1), %s785_s25, 9 }
  0x2a   : > { %s157_s28 = scalar_lea.sflag (!%p151_p1), [#allocation3], %s785_s25  ;;  %s789_s29 = scalar_lea.vmem (!%p151_p1), [#allocation2], %s508_s26 }
  0x30   : > { %645 = dma.done.wait (%p743_p8), %s157_s28, 8192  }
  0x31   : > { %647 = vsyncadd (%p743_p8), %s157_s28, 4294959104  ;;  %s509_s16 = sshll.u32 %s785_s25, 7  ;;  %v185_v0 = vld [vmem:[%s789_s29] sm:$0xff]  ;;  %v186_v1 = vld [vmem:[%s789_s29 + $0x8] sm:$0xff]  ;;  %v682_v12 = vmov 0   ;;  %s517_s22 = sshll.u32 %s666_s9, 11 }
  0x32   : > { %v187_v2 = vld [vmem:[%s789_s29 + $0x10] sm:$0xff]  ;;  %v188_v3 = vld [vmem:[%s789_s29 + $0x18] sm:$0xff]  ;;  %vm249_vm0 = vcmp.gt.f32.partialorder %v185_v0, 0.0  ;;  %vm250_vm1 = vcmp.gt.f32.partialorder %v186_v1, 0.0  ;;  %v189_v4 = vld [vmem:[%s789_s29 + $0x20] sm:$0xff]  ;;  %s813_s18 = scalar_lea.vmem [#allocation5], %s509_s16  ;;  %s901_s3 = scalar_lea.hbm %s955_s1, %s517_s22 }
  0x33   : > { %vm251_vm2 = vcmp.gt.f32.partialorder %v187_v2, 0.0  ;;  %v190_v5 = vld [vmem:[%s789_s29 + $0x28] sm:$0xff]  ;;  %vm252_vm3 = vcmp.gt.f32.partialorder %v188_v3, 0.0  ;;  %vm313_vm4 = vmpackc.low %vm250_vm1, %vm249_vm0  ;;  %v191_v6 = vld [vmem:[%s789_s29 + $0x30] sm:$0xff]  ;;  %vm253_vm5 = vcmp.gt.f32.partialorder %v189_v4, 0.0  ;;  %s410_s27 = sshll.u32 %s813_s18, 4  ;;  %s903_s27 = int_to_ptr.vmem [resolvable:$true] %s410_s27 }
  0x34   : > { %v192_v7 = vld [vmem:[%s789_s29 + $0x38] sm:$0xff]  ;;  %vm254_vm6 = vcmp.gt.f32.partialorder %v190_v5, 0.0  ;;  %vm314_vm7 = vmpackc.low %vm252_vm3, %vm251_vm2  ;;  %vm255_vm8 = vcmp.gt.f32.partialorder %v191_v6, 0.0  ;;  %v193_v8 = vld [vmem:[%s789_s29 + $0x40] sm:$0xff]  ;;  %s394_s9 = scalar_lea.sflag [#allocation4], %s785_s25  ;;  %s592_s4 = scalar_lea.vmem %s903_s27, 2048 }
  0x35   : > { %vm256_vm9 = vcmp.gt.f32.partialorder %v192_v7, 0.0  ;;  %v194_v9 = vld [vmem:[%s789_s29 + $0x48] sm:$0xff]  ;;  %vm315_vm10 = vmpackc.even %vm314_vm7, %vm313_vm4  ;;  %v195_v10 = vld [vmem:[%s789_s29 + $0x50] sm:$0xff]  ;;  %vm257_vm12 = vcmp.gt.f32.partialorder %v193_v8, 0.0  ;;  %p593_p2 = scmp.ne.s32.totalorder %s903_s27, %s592_s4  ;;  %s683_s5 = smov [#allocation5]  }
  0x36   : > { %v196_v11 = vld [vmem:[%s789_s29 + $0x58] sm:$0xff]  ;;  %v361_v13 = vsel %vm315_vm10, 16843009, %v682_v12  ;;  %vm316_vm11 = vmpackc.low %vm254_vm6, %vm253_vm5  ;;  %vm258_vm13 = vcmp.gt.f32.partialorder %v194_v9, 0.0  ;;  %v197_v14 = vld [vmem:[%s789_s29 + $0x60] sm:$0xff]  ;;  %vm259_vm15 = vcmp.gt.f32.partialorder %v195_v10, 0.0 }
  0x37   : > { %v198_v15 = vld [vmem:[%s789_s29 + $0x68] sm:$0xff]  ;;  %377 = vst [vmem:[%s813_s18] sm:$0xff] %v361_v13  ;;  %vm317_vm14 = vmpackc.low %vm256_vm9, %vm255_vm8  ;;  %vm260_vm0 = vcmp.gt.f32.partialorder %v196_v11, 0.0  ;;  %v199_v16 = vld [vmem:[%s789_s29 + $0x70] sm:$0xff]  ;;  %vm261_vm3 = vcmp.gt.f32.partialorder %v197_v14, 0.0  ;;  %p594_p3 = pnand %p593_p2, %p747_p9  ;;  %s596_s12 = sshll.u32 %s683_s5, 4  ;;  %s597_s12 = int_to_ptr.vmem [resolvable:$false] %s596_s12 }
  0x38   : > { %v200_v17 = vld [vmem:[%s789_s29 + $0x78] sm:$0xff]  ;;  %vm318_vm1 = vmpackc.even %vm317_vm14, %vm316_vm11  ;;  %vm262_vm4 = vcmp.gt.f32.partialorder %v198_v15, 0.0  ;;  %v201_v19 = vld [vmem:[%s789_s29 + $0x80] sm:$0xff]  ;;  %vm263_vm6 = vcmp.gt.f32.partialorder %v199_v16, 0.0  ;;  %s598_s13 = scalar_lea.vmem %s597_s12, 4096  ;;  %p599_p5 = scmp.lt.s32.totalorder %s903_s27, %s597_s12 }
  0x39   : > { %v362_v18 = vsel %vm318_vm1, 16843009, %v682_v12  ;;  %vm319_vm2 = vmpackc.low %vm258_vm13, %vm257_vm12  ;;  %v202_v20 = vld [vmem:[%s789_s29 + $0x88] sm:$0xff]  ;;  %vm264_vm7 = vcmp.gt.f32.partialorder %v200_v17, 0.0  ;;  %v203_v21 = vld [vmem:[%s789_s29 + $0x90] sm:$0xff]  ;;  %vm265_vm10 = vcmp.gt.f32.partialorder %v201_v19, 0.0  ;;  %p595_p4 = pneg %p594_p3  ;;  %p600_p6 = scmp.lt.s32.totalorder %s598_s13, %s592_s4 }
  0x3a   : > { %378 = vst [vmem:[%s813_s18 + $0x8] sm:$0xff] %v362_v18  ;;  %vm320_vm5 = vmpackc.low %vm260_vm0, %vm259_vm15  ;;  %v204_v22 = vld [vmem:[%s789_s29 + $0x98] sm:$0xff]  ;;  %vm266_vm11 = vcmp.gt.f32.partialorder %v202_v20, 0.0  ;;  %v205_v24 = vld [vmem:[%s789_s29 + $0xa0] sm:$0xff]  ;;  %vm267_vm13 = vcmp.gt.f32.partialorder %v203_v21, 0.0 }
  0x3b   : > { %vm321_vm8 = vmpackc.even %vm320_vm5, %vm319_vm2  ;;  %v206_v25 = vld [vmem:[%s789_s29 + $0xa8] sm:$0xff]  ;;  %vm268_vm14 = vcmp.gt.f32.partialorder %v204_v22, 0.0  ;;  %v207_v26 = vld [vmem:[%s789_s29 + $0xb0] sm:$0xff]  ;;  %vm269_vm1 = vcmp.gt.f32.partialorder %v205_v24, 0.0  ;;  %p601_p7 = por %p600_p6, %p599_p5 }
  0x3c   : > { %v363_v23 = vsel %vm321_vm8, 16843009, %v682_v12  ;;  %vm322_vm9 = vmpackc.low %vm262_vm4, %vm261_vm3  ;;  %v208_v27 = vld [vmem:[%s789_s29 + $0xb8] sm:$0xff]  ;;  %vm270_vm2 = vcmp.gt.f32.partialorder %v206_v25, 0.0  ;;  %v209_v29 = vld [vmem:[%s789_s29 + $0xc0] sm:$0xff]  ;;  %vm271_vm4 = vcmp.gt.f32.partialorder %v207_v26, 0.0 }
  0x3d   : > { %379 = vst [vmem:[%s813_s18 + $0x10] sm:$0xff] %v363_v23  ;;  %vm323_vm12 = vmpackc.low %vm264_vm7, %vm263_vm6  ;;  %v210_v30 = vld [vmem:[%s789_s29 + $0xc8] sm:$0xff]  ;;  %vm272_vm5 = vcmp.gt.f32.partialorder %v208_v27, 0.0  ;;  %v211_v31 = vld [vmem:[%s789_s29 + $0xd0] sm:$0xff]  ;;  %vm273_vm8 = vcmp.gt.f32.partialorder %v209_v29, 0.0  ;;  %p602_p8 = pnand %p601_p7, %p595_p4 }
  0x3e   : > { %vm324_vm15 = vmpackc.even %vm323_vm12, %vm322_vm9  ;;  %v212_v32 = vld [vmem:[%s789_s29 + $0xd8] sm:$0xff]  ;;  %vm274_vm9 = vcmp.gt.f32.partialorder %v210_v30, 0.0  ;;  %v213_v34 = vld [vmem:[%s789_s29 + $0xe0] sm:$0xff] }
  0x3f   : > { %v364_v28 = vsel %vm324_vm15, 16843009, %v682_v12  ;;  %vm325_vm0 = vmpackc.low %vm266_vm11, %vm265_vm10  ;;  %v214_v35 = vld [vmem:[%s789_s29 + $0xe8] sm:$0xff]  ;;  %vm275_vm11 = vcmp.gt.f32.partialorder %v211_v31, 0.0  ;;  %vm276_vm12 = vcmp.gt.f32.partialorder %v212_v32, 0.0  ;;  %v215_v36 = vld [vmem:[%s789_s29 + $0xf0] sm:$0xff] }
  0x40   : > { %380 = vst [vmem:[%s813_s18 + $0x18] sm:$0xff] %v364_v28  ;;  %vm326_vm3 = vmpackc.low %vm268_vm14, %vm267_vm13  ;;  %v216_v37 = vld [vmem:[%s789_s29 + $0xf8] sm:$0xff]  ;;  %vm277_vm15 = vcmp.gt.f32.partialorder %v213_v34, 0.0  ;;  %v217_v39 = vld [vmem:[%s789_s29 + $0x100] sm:$0xff] }
  0x41   : > { %vm327_vm6 = vmpackc.even %vm326_vm3, %vm325_vm0  ;;  %vm278_vm0 = vcmp.gt.f32.partialorder %v214_v35, 0.0  ;;  %v218_v40 = vld [vmem:[%s789_s29 + $0x108] sm:$0xff]  ;;  %vm280_vm3 = vcmp.gt.f32.partialorder %v216_v37, 0.0  ;;  %v219_v41 = vld [vmem:[%s789_s29 + $0x110] sm:$0xff] }
  0x42   : > { %v365_v33 = vsel %vm327_vm6, 16843009, %v682_v12  ;;  %vm328_vm7 = vmpackc.low %vm270_vm2, %vm269_vm1  ;;  %vm279_vm2 = vcmp.gt.f32.partialorder %v215_v36, 0.0  ;;  %v220_v42 = vld [vmem:[%s789_s29 + $0x118] sm:$0xff]  ;;  %vm281_vm6 = vcmp.gt.f32.partialorder %v217_v39, 0.0  ;;  %v221_v44 = vld [vmem:[%s789_s29 + $0x120] sm:$0xff] }
  0x43   : > { %381 = vst [vmem:[%s813_s18 + $0x20] sm:$0xff] %v365_v33  ;;  %vm329_vm10 = vmpackc.low %vm272_vm5, %vm271_vm4  ;;  %v222_v45 = vld [vmem:[%s789_s29 + $0x128] sm:$0xff]  ;;  %v223_v46 = vld [vmem:[%s789_s29 + $0x130] sm:$0xff] }
  0x44   : > { %vm330_vm13 = vmpackc.even %vm329_vm10, %vm328_vm7  ;;  %vm282_vm7 = vcmp.gt.f32.partialorder %v218_v40, 0.0  ;;  %vm284_vm10 = vcmp.gt.f32.partialorder %v220_v42, 0.0  ;;  %v224_v47 = vld [vmem:[%s789_s29 + $0x138] sm:$0xff]  ;;  %v225_v49 = vld [vmem:[%s789_s29 + $0x140] sm:$0xff] }
  0x45   : > { %v366_v38 = vsel %vm330_vm13, 16843009, %v682_v12  ;;  %vm331_vm14 = vmpackc.low %vm274_vm9, %vm273_vm8  ;;  %vm283_vm9 = vcmp.gt.f32.partialorder %v219_v41, 0.0  ;;  %vm285_vm13 = vcmp.gt.f32.partialorder %v221_v44, 0.0  ;;  %v226_v50 = vld [vmem:[%s789_s29 + $0x148] sm:$0xff]  ;;  %v227_v51 = vld [vmem:[%s789_s29 + $0x150] sm:$0xff] }
  0x46   : > { %382 = vst [vmem:[%s813_s18 + $0x28] sm:$0xff] %v366_v38  ;;  %vm332_vm1 = vmpackc.low %vm276_vm12, %vm275_vm11  ;;  %v228_v52 = vld [vmem:[%s789_s29 + $0x158] sm:$0xff]  ;;  %v229_v54 = vld [vmem:[%s789_s29 + $0x160] sm:$0xff] }
  0x47   : > { %vm333_vm4 = vmpackc.even %vm332_vm1, %vm331_vm14  ;;  %vm286_vm14 = vcmp.gt.f32.partialorder %v222_v45, 0.0  ;;  %vm288_vm1 = vcmp.gt.f32.partialorder %v224_v47, 0.0  ;;  %v230_v55 = vld [vmem:[%s789_s29 + $0x168] sm:$0xff]  ;;  %v231_v56 = vld [vmem:[%s789_s29 + $0x170] sm:$0xff] }
  0x48   : > { %v367_v43 = vsel %vm333_vm4, 16843009, %v682_v12  ;;  %vm334_vm5 = vmpackc.low %vm278_vm0, %vm277_vm15  ;;  %vm287_vm0 = vcmp.gt.f32.partialorder %v223_v46, 0.0  ;;  %vm289_vm4 = vcmp.gt.f32.partialorder %v225_v49, 0.0  ;;  %v232_v57 = vld [vmem:[%s789_s29 + $0x178] sm:$0xff]  ;;  %v233_v59 = vld [vmem:[%s789_s29 + $0x180] sm:$0xff] }
  0x49   : > { %383 = vst [vmem:[%s813_s18 + $0x30] sm:$0xff] %v367_v43  ;;  %vm335_vm8 = vmpackc.low %vm280_vm3, %vm279_vm2  ;;  %v234_v60 = vld [vmem:[%s789_s29 + $0x188] sm:$0xff]  ;;  %v235_v61 = vld [vmem:[%s789_s29 + $0x190] sm:$0xff] }
  0x4a   : > { %vm336_vm11 = vmpackc.even %vm335_vm8, %vm334_vm5  ;;  %vm290_vm5 = vcmp.gt.f32.partialorder %v226_v50, 0.0  ;;  %vm292_vm8 = vcmp.gt.f32.partialorder %v228_v52, 0.0  ;;  %v236_v62 = vld [vmem:[%s789_s29 + $0x198] sm:$0xff]  ;;  %v237_v0 = vld [vmem:[%s789_s29 + $0x1a0] sm:$0xff] }
  0x4b   : > { %v368_v48 = vsel %vm336_vm11, 16843009, %v682_v12  ;;  %vm337_vm12 = vmpackc.low %vm282_vm7, %vm281_vm6  ;;  %vm291_vm7 = vcmp.gt.f32.partialorder %v227_v51, 0.0  ;;  %vm293_vm11 = vcmp.gt.f32.partialorder %v229_v54, 0.0  ;;  %v238_v1 = vld [vmem:[%s789_s29 + $0x1a8] sm:$0xff]  ;;  %v239_v2 = vld [vmem:[%s789_s29 + $0x1b0] sm:$0xff] }
  0x4c   : > { %384 = vst [vmem:[%s813_s18 + $0x38] sm:$0xff] %v368_v48  ;;  %vm338_vm15 = vmpackc.low %vm284_vm10, %vm283_vm9  ;;  %v240_v3 = vld [vmem:[%s789_s29 + $0x1b8] sm:$0xff]  ;;  %v241_v5 = vld [vmem:[%s789_s29 + $0x1c0] sm:$0xff] }
  0x4d   : > { %vm339_vm2 = vmpackc.even %vm338_vm15, %vm337_vm12  ;;  %vm294_vm12 = vcmp.gt.f32.partialorder %v230_v55, 0.0  ;;  %vm296_vm15 = vcmp.gt.f32.partialorder %v232_v57, 0.0  ;;  %v242_v6 = vld [vmem:[%s789_s29 + $0x1c8] sm:$0xff]  ;;  %v243_v7 = vld [vmem:[%s789_s29 + $0x1d0] sm:$0xff] }
  0x4e   : > { %v369_v53 = vsel %vm339_vm2, 16843009, %v682_v12  ;;  %vm340_vm3 = vmpackc.low %vm286_vm14, %vm285_vm13  ;;  %vm295_vm14 = vcmp.gt.f32.partialorder %v231_v56, 0.0  ;;  %vm297_vm2 = vcmp.gt.f32.partialorder %v233_v59, 0.0  ;;  %v244_v8 = vld [vmem:[%s789_s29 + $0x1d8] sm:$0xff]  ;;  %v245_v10 = vld [vmem:[%s789_s29 + $0x1e0] sm:$0xff] }
  0x4f   : > { %385 = vst [vmem:[%s813_s18 + $0x40] sm:$0xff] %v369_v53  ;;  %vm341_vm6 = vmpackc.low %vm288_vm1, %vm287_vm0  ;;  %v246_v11 = vld [vmem:[%s789_s29 + $0x1e8] sm:$0xff]  ;;  %v247_v13 = vld [vmem:[%s789_s29 + $0x1f0] sm:$0xff] }
  0x50   : > { %vm342_vm9 = vmpackc.even %vm341_vm6, %vm340_vm3  ;;  %vm298_vm3 = vcmp.gt.f32.partialorder %v234_v60, 0.0  ;;  %vm300_vm6 = vcmp.gt.f32.partialorder %v236_v62, 0.0  ;;  %v248_v14 = vld [vmem:[%s789_s29 + $0x1f8] sm:$0xff] }
  0x51   : > { %v370_v58 = vsel %vm342_vm9, 16843009, %v682_v12  ;;  %vm343_vm10 = vmpackc.low %vm290_vm5, %vm289_vm4  ;;  %vm299_vm5 = vcmp.gt.f32.partialorder %v235_v61, 0.0  ;;  %vm301_vm9 = vcmp.gt.f32.partialorder %v237_v0, 0.0 }
  0x52   : > { %386 = vst [vmem:[%s813_s18 + $0x48] sm:$0xff] %v370_v58  ;;  %vm344_vm13 = vmpackc.low %vm292_vm8, %vm291_vm7 }
  0x53   : > { %vm345_vm0 = vmpackc.even %vm344_vm13, %vm343_vm10  ;;  %vm302_vm10 = vcmp.gt.f32.partialorder %v238_v1, 0.0  ;;  %vm304_vm13 = vcmp.gt.f32.partialorder %v240_v3, 0.0 }
  0x54   : > { %v371_v63 = vsel %vm345_vm0, 16843009, %v682_v12  ;;  %vm346_vm1 = vmpackc.low %vm294_vm12, %vm293_vm11  ;;  %vm303_vm12 = vcmp.gt.f32.partialorder %v239_v2, 0.0  ;;  %vm305_vm0 = vcmp.gt.f32.partialorder %v241_v5, 0.0 }
  0x55   : > { %387 = vst [vmem:[%s813_s18 + $0x50] sm:$0xff] %v371_v63  ;;  %vm347_vm4 = vmpackc.low %vm296_vm15, %vm295_vm14 }
  0x56   : > { %vm348_vm7 = vmpackc.even %vm347_vm4, %vm346_vm1  ;;  %vm306_vm1 = vcmp.gt.f32.partialorder %v242_v6, 0.0  ;;  %vm308_vm4 = vcmp.gt.f32.partialorder %v244_v8, 0.0 }
  0x57   : > { %v372_v4 = vsel %vm348_vm7, 16843009, %v682_v12  ;;  %vm349_vm8 = vmpackc.low %vm298_vm3, %vm297_vm2  ;;  %vm307_vm3 = vcmp.gt.f32.partialorder %v243_v7, 0.0  ;;  %vm309_vm7 = vcmp.gt.f32.partialorder %v245_v10, 0.0 }
  0x58   : > { %388 = vst [vmem:[%s813_s18 + $0x58] sm:$0xff] %v372_v4  ;;  %vm350_vm11 = vmpackc.low %vm300_vm6, %vm299_vm5 }
  0x59   : > { %vm351_vm14 = vmpackc.even %vm350_vm11, %vm349_vm8  ;;  %vm310_vm8 = vcmp.gt.f32.partialorder %v246_v11, 0.0  ;;  %vm312_vm11 = vcmp.gt.f32.partialorder %v248_v14, 0.0 }
  0x5a   : > { %v373_v9 = vsel %vm351_vm14, 16843009, %v682_v12  ;;  %vm352_vm15 = vmpackc.low %vm302_vm10, %vm301_vm9  ;;  %vm311_vm10 = vcmp.gt.f32.partialorder %v247_v13, 0.0 }
  0x5b   : > { %389 = vst [vmem:[%s813_s18 + $0x60] sm:$0xff] %v373_v9  ;;  %vm353_vm2 = vmpackc.low %vm304_vm13, %vm303_vm12 }
  0x5c   : > { %vm354_vm5 = vmpackc.even %vm353_vm2, %vm352_vm15 }
  0x5d   : > { %v374_v15 = vsel %vm354_vm5, 16843009, %v682_v12  ;;  %vm355_vm6 = vmpackc.low %vm306_vm1, %vm305_vm0 }
  0x5e   : > { %390 = vst [vmem:[%s813_s18 + $0x68] sm:$0xff] %v374_v15  ;;  %vm356_vm9 = vmpackc.low %vm308_vm4, %vm307_vm3 }
  0x5f   : > { %vm357_vm12 = vmpackc.even %vm356_vm9, %vm355_vm6 }
  0x60   : > { %v375_v16 = vsel %vm357_vm12, 16843009, %v682_v12  ;;  %vm358_vm13 = vmpackc.low %vm310_vm8, %vm309_vm7 }
  0x61   : > { %391 = vst [vmem:[%s813_s18 + $0x70] sm:$0xff] %v375_v16  ;;  %vm359_vm14 = vmpackc.low %vm312_vm11, %vm311_vm10 }
  0x62   : > { %vm360_vm15 = vmpackc.even %vm359_vm14, %vm358_vm13 }
  0x63   : > { %v376_v17 = vsel %vm360_vm15, 16843009, %v682_v12 }
  0x64   : > { %392 = vst [vmem:[%s813_s18 + $0x78] sm:$0xff] %v376_v17 }
  0x65   : > { %605 = shalt.err (!%p602_p8)
}
  0x66   : > { %s606_s15 = scalar_lea.hbm %s901_s3, 2048  ;;  %s610_s24 = scalar_lea.hbm %s955_s1, 4096 }
  0x67   : > { %p607_p10 = scmp.ne.s32.totalorder %s901_s3, %s606_s15  ;;  %p611_p1 = scmp.lt.u32.totalorder %s901_s3, %s955_s1 }
  0x68   : > { %p612_p2 = scmp.lt.u32.totalorder %s610_s24, %s606_s15  ;;  %p614_p4 = scmp.lt.u32.totalorder %s606_s15, %s901_s3 }
  0x69   : > { %p608_p13 = pnand %p607_p10, %p747_p9 }
  0x6a   : > { %p613_p3 = por %p612_p2, %p611_p1 }
  0x6b   : > { %p609_p0 = pneg %p608_p13 }
  0x6c   : > { %p615_p5 = por %p614_p4, %p613_p3 }
  0x6e   : > { %p616_p6 = pnand %p615_p5, %p609_p0 }
  0x70   : > { %619 = shalt.err (!%p616_p6)
}
  0x71   : > { %s684_s29 = smov 128   ;;  %s685_s16 = smov 8  }
  0x72   : > { %528 = dma.vmem_to_hbm [thread:$0]  (%p747_p9), %s903_s27, 2048, %s901_s3, %s394_s9, %s684_s29, %s684_s29, %s685_s16  }
  0x73 PF: > { %s425_s18 = sand.u32 1, %s654_s6   ;;  %p531_p7 = pnand %p500_p12, %p754_p11 }
  0x74   : > { %s426_s22 = scalar_lea.sflag [#allocation4], %s425_s18 }
  0x75   : > { %649 = dma.done.wait (!%p531_p7), %s426_s22, 2048  }
  0x76   : > { %651 = vsyncadd (!%p531_p7), %s426_s22, 4294965248  ;;  %s17_s11 = sadd.s32 1, %s674_s11   ;;  %s960_s6 = smov %s658_s7 }
  0x77   : > { %p14_p8 = scmp.ge.s32.totalorder %s17_s11, 4   ;;  %s961_s7 = smov %s662_s8 }
  0x78   : > { %s962_s8 = smov %s752_s20  ;;  %s963_s9 = smov %s670_s10 }
  0x79   : > { %s964_s10 = smov %s966_s14  ;;  %16 = sbr.rel (!%p14_p8) target bundleno = 6 (0x6), region = 74 }
  0x80   :  { %431 = vsyncpa [#allocation3], 1 }
  0x81   :  { %433 = vsyncpa [#allocation3 + $0x1], 1 }
  0x82   :  { %434 = vsyncpa [#allocation4], 1 }
  0x83   :  { %436 = vsyncpa [#allocation4 + $0x1], 1 }

</bundles_post_ra>
